<compile_context>
chip_gen: v6e
topology: v6e:2x2x1
jax: 0.10.0
libtpu: 0.0.40
codegen_flags: <defaults>
</compile_context>

<pallas_src>
import jax
import jax.numpy as jnp
from jax.experimental import pallas as pl
from jax.experimental.pallas import tpu as pltpu


def _parallel_kernel(x0_ref, w0_ref, b0_ref, x1_ref, w1t_ref, b1_ref,
                     o0_ref, o1_ref):
    """Fused single-step kernel: Linear branch then 1x1-conv branch.

    x0_ref : (B*S, H_in)        w0_ref : (H_in, H_out)   b0_ref : (1, H_out)
    x1_ref : (Cin, B*H*W)       w1t_ref: (Cout, Cin)     b1_ref : (Cout, 1)
    o0_ref : (B*S, H_out)       o1_ref : (Cout, B*H*W)
    """
    # Branch 0: Linear.  f32 accumulate + f32 bias epilogue (no bf16 VPU on v5e).
    acc0 = jnp.dot(x0_ref[...], w0_ref[...], preferred_element_type=jnp.float32)
    o0_ref[...] = (acc0 + b0_ref[...]).astype(o0_ref.dtype)

    # Branch 1: 1x1 conv as a single matmul with the spatial*batch axis (512) on
    # lanes -> one MXU push, one contiguous unmasked store slab.
    acc1 = jnp.dot(w1t_ref[...], x1_ref[...], preferred_element_type=jnp.float32)
    o1_ref[...] = (acc1 + b1_ref[...]).astype(o1_ref.dtype)


@jax.jit
def parallel_forward(x0, w_lin, b_lin, x1_nchw, w_conv, b_conv):
    """Runs both branches of the Parallel container in a single fused pallas_call."""
    B0, S0, H_in = x0.shape
    H_out = w_lin.shape[1]
    x0_2d = x0.reshape(B0 * S0, H_in)

    B1, Cin, Hh, Ww = x1_nchw.shape
    Cout = w_conv.shape[1]
    S1 = Hh * Ww
    # (B, Cin, H*W) -> (Cin, B*H*W): tiny (~16 KB) transpose folded under the same jit.
    x1_2d = x1_nchw.reshape(B1, Cin, S1).transpose(1, 0, 2).reshape(Cin, B1 * S1)
    w_conv_t = w_conv.T                       # (Cout, Cin); tiny, folded under jit

    itemsize = jnp.dtype(x0.dtype).itemsize
    flops = 2 * (B0 * S0 * H_in * H_out) + 2 * (Cout * Cin * B1 * S1)
    bytes_accessed = itemsize * (
        B0 * S0 * H_in + H_in * H_out + H_out          # branch-0 inputs
        + Cin * B1 * S1 + Cout * Cin + Cout            # branch-1 inputs
        + B0 * S0 * H_out + Cout * B1 * S1)            # outputs

    out0, out1 = pl.pallas_call(
        _parallel_kernel,
        out_shape=(
            jax.ShapeDtypeStruct((B0 * S0, H_out), x0.dtype),
            jax.ShapeDtypeStruct((Cout, B1 * S1), x1_nchw.dtype),
        ),
        # No grid: single invocation, full arrays resident in VMEM (< 100 KiB total).
        cost_estimate=pl.CostEstimate(
            flops=flops, transcendentals=0, bytes_accessed=bytes_accessed),
    )(x0_2d, w_lin, b_lin.reshape(1, H_out), x1_2d, w_conv_t,
      b_conv.reshape(Cout, 1))

    y0 = out0.reshape(B0, S0, H_out)
    y1 = out1.reshape(Cout, B1, Hh, Ww).transpose(1, 0, 2, 3)   # back to NCHW
    return y0, y1


class Parallel:
    """JAX/Pallas analogue of the PyTorch Parallel container, specialized to the
    concrete (Linear(32,32), Conv2d(4,8,1x1)) instantiation: both branches are
    fused into a single jitted, single-step pallas_call."""

    def __init__(self, linear_params, conv_params):
        self.linear_params = linear_params    # (w: (H_in, H_out), b: (H_out,))
        self.conv_params = conv_params        # (w: (Cin, Cout),  b: (Cout,))

    def __call__(self, inputs):
        assert type(inputs) is list, "type of inputs is: " + str(type(inputs))
        assert len(inputs) == 2
        x0, x1 = inputs
        w_lin, b_lin = self.linear_params
        w_conv, b_conv = self.conv_params
        y0, y1 = parallel_forward(x0, w_lin, b_lin, x1, w_conv, b_conv)
        return [y0, y1]


if __name__ == "__main__":
    key = jax.random.PRNGKey(0)
    k_x0, k_x1, k_w0, k_b0, k_w1, k_b1 = jax.random.split(key, 6)

    # Small shapes consistent with the chosen instantiation.
    B, S, H = 2, 8, 32                 # branch 0: Linear(32, 32)
    Cin, Cout, HH, WW = 4, 8, 16, 16   # branch 1: Conv2d(4, 8, kernel_size=1)

    x0 = jax.random.normal(k_x0, (B, S, H), dtype=jnp.float32)
    x1 = jax.random.normal(k_x1, (B, Cin, HH, WW), dtype=jnp.float32)

    # Deterministic parameter init (synthetic, not a checkpoint load).
    w_lin = jax.random.normal(k_w0, (H, H), dtype=jnp.float32) * 0.1
    b_lin = jax.random.normal(k_b0, (H,), dtype=jnp.float32) * 0.1
    w_conv = jax.random.normal(k_w1, (Cin, Cout), dtype=jnp.float32) * 0.1
    b_conv = jax.random.normal(k_b1, (Cout,), dtype=jnp.float32) * 0.1

    model = Parallel((w_lin, b_lin), (w_conv, b_conv))

    outs = model([x0, x1])
    outs = [jax.block_until_ready(o) for o in outs]

    # Reference check in plain JAX.
    ref0 = x0 @ w_lin + b_lin
    ref1 = jnp.einsum("bchw,co->bohw", x1, w_conv) + b_conv[None, :, None, None]
    assert outs[0].shape == (B, S, H)
    assert outs[1].shape == (B, Cout, HH, WW)
    assert jnp.allclose(outs[0], ref0, atol=1e-5)
    assert jnp.allclose(outs[1], ref1, atol=1e-5)

    print("KERNEL_OK")
</pallas_src>

<mosaic_0001>
module attributes {stable_mosaic.version = 11 : i64} {
  func.func @_parallel_kernel(%arg0: memref<16x32xf32, #tpu.memory_space<vmem>>, %arg1: memref<32x32xf32, #tpu.memory_space<vmem>>, %arg2: memref<1x32xf32, #tpu.memory_space<vmem>>, %arg3: memref<4x512xf32, #tpu.memory_space<vmem>>, %arg4: memref<8x4xf32, #tpu.memory_space<vmem>>, %arg5: memref<8x1xf32, #tpu.memory_space<vmem>>, %arg6: memref<16x32xf32, #tpu.memory_space<vmem>>, %arg7: memref<8x512xf32, #tpu.memory_space<vmem>>) attributes {dimension_semantics = [], scalar_prefetch = 0 : i64, scratch_operands = 0 : i64, tpu.core_type = #tpu.core_type<tc>} {
    %c0 = arith.constant 0 : index
    %c0_0 = arith.constant 0 : index
    %0 = vector.load %arg0[%c0, %c0_0] : memref<16x32xf32, #tpu.memory_space<vmem>>, vector<16x32xf32>
    %c0_1 = arith.constant 0 : index
    %c0_2 = arith.constant 0 : index
    %1 = vector.load %arg1[%c0_1, %c0_2] : memref<32x32xf32, #tpu.memory_space<vmem>>, vector<32x32xf32>
    %cst = arith.constant dense<0.000000e+00> : vector<16x32xf32>
    %2 = tpu.matmul %0, %1, %cst {dimension_numbers = #tpu.dot_dimension_numbers<[1], [0], [0], [1], [0, 0, 1, 1], [], []>} : vector<16x32xf32>, vector<32x32xf32>, vector<16x32xf32> -> vector<16x32xf32>
    %c0_3 = arith.constant 0 : index
    %c0_4 = arith.constant 0 : index
    %3 = vector.load %arg2[%c0_3, %c0_4] : memref<1x32xf32, #tpu.memory_space<vmem>>, vector<1x32xf32>
    %4 = vector.broadcast %3 : vector<1x32xf32> to vector<16x32xf32>
    %5 = arith.addf %2, %4 : vector<16x32xf32>
    %c0_5 = arith.constant 0 : index
    %c0_6 = arith.constant 0 : index
    %6 = vector.load %arg6[%c0_5, %c0_6] : memref<16x32xf32, #tpu.memory_space<vmem>>, vector<16x32xf32>
    tpu.vector_store %arg6[%c0_5, %c0_6], %5 {strides = array<i32>} : memref<16x32xf32, #tpu.memory_space<vmem>>, vector<16x32xf32>,
    %c0_7 = arith.constant 0 : index
    %c0_8 = arith.constant 0 : index
    %7 = vector.load %arg4[%c0_7, %c0_8] : memref<8x4xf32, #tpu.memory_space<vmem>>, vector<8x4xf32>
    %c0_9 = arith.constant 0 : index
    %c0_10 = arith.constant 0 : index
    %8 = vector.load %arg3[%c0_9, %c0_10] : memref<4x512xf32, #tpu.memory_space<vmem>>, vector<4x512xf32>
    %cst_11 = arith.constant dense<0.000000e+00> : vector<8x512xf32>
    %9 = tpu.matmul %7, %8, %cst_11 {dimension_numbers = #tpu.dot_dimension_numbers<[1], [0], [0], [1], [0, 0, 1, 1], [], []>} : vector<8x4xf32>, vector<4x512xf32>, vector<8x512xf32> -> vector<8x512xf32>
    %c0_12 = arith.constant 0 : index
    %c0_13 = arith.constant 0 : index
    %10 = vector.load %arg5[%c0_12, %c0_13] : memref<8x1xf32, #tpu.memory_space<vmem>>, vector<8x1xf32>
    %11 = vector.broadcast %10 : vector<8x1xf32> to vector<8x512xf32>
    %12 = arith.addf %9, %11 : vector<8x512xf32>
    %c0_14 = arith.constant 0 : index
    %c0_15 = arith.constant 0 : index
    %13 = vector.load %arg7[%c0_14, %c0_15] : memref<8x512xf32, #tpu.memory_space<vmem>>, vector<8x512xf32>
    tpu.vector_store %arg7[%c0_14, %c0_15], %12 {strides = array<i32>} : memref<8x512xf32, #tpu.memory_space<vmem>>, vector<8x512xf32>,
    return
  }
}

</mosaic_0001>

<bundles_post_ra>
// kernel: parallel_forward.1
= control target key start
LH: loop header
LB: loop body
LE: loop exit
PB: predicated region body
PF: predicated region fallthrough
CT: control target
= control target key end

     0   :  { %vm140_vm0 = vcmask 1043456   ;;  %v371_v4 = vmov 0.0   ;;  %vm136_vm1 = vcmask 31744   ;;  %v372_v9 = vmov 0   ;;  %s474_s0 = inlined_call_operand.vmem [shape: f32[16,32], index: 0, kind: input, shape index: {}]   ;;  %s475_s1 = inlined_call_operand.vmem [shape: f32[32,32], index: 1, kind: input, shape index: {}]   ;;  %s476_s2 = inlined_call_operand.vmem [shape: f32[1,32], index: 2, kind: input, shape index: {}]   ;;  %s477_s3 = inlined_call_operand.vmem [shape: f32[4,512], index: 3, kind: input, shape index: {}]   ;;  %s478_s4 = inlined_call_operand.vmem [shape: f32[8,4], index: 4, kind: input, shape index: {}]   ;;  %s479_s5 = inlined_call_operand.vmem [shape: f32[8,1], index: 5, kind: input, shape index: {}]   ;;  %s480_s6 = inlined_call_operand.hbm [shape: f32[16,32], index: 6, kind: output, shape index: {0}]   ;;  %s481_s7 = inlined_call_operand.vmem [shape: f32[8,512], index: 7, kind: output, shape index: {1}]  }
   0x1   :  { %v31_v0 = vld [vmem:[%s475_s1 + $0x18] sm:$0xff]  ;;  %v30_v1 = vld [vmem:[%s475_s1 + $0x10] sm:$0xff]  ;;  %v124_v2 = vld [vmem:[%s477_s3] sm:$0xff]  ;;  %213 = vmatprep.mubr.f32.mxu1 %v371_v4  ;;  %346 = vset.pattern.permute.xlu0 %v372_v9 }
   0x2   :  { %330 = vmatprep.subr.mxu0 %v31_v0  ;;  %v134_v3 = vcombine.high %v124_v2, %v124_v2  ;;  %v125_v5 = vld [vmem:[%s477_s3 + $0x8] sm:$0xff]  ;;  %v123_v7 = vld [vmem:[%s478_s4] sm:$0xff] }
   0x3   :  { %331 = vmatpush3.msra.mxu0 %v31_v0  ;;  %v29_v6 = vld [vmem:[%s475_s1 + $0x8] sm:$0xff]  ;;  %v135_v8 = vcombine.high %v125_v5, %v125_v5 }
   0x4   :  { %332 = vmatprep.subr.mxu0 %v30_v1  ;;  %318 = vmatprep.subr.msk.mxu1 %vm140_vm0, %v134_v3 }
   0x5   :  { %13 = vsyncpa [#allocation3], 0  ;;  %333 = vmatpush3.msra.mxu0 %v30_v1  ;;  %319 = vmatpush1.msk.msra.mxu1 %vm140_vm0, %v124_v2  ;;  %v28_v10 = vld [vmem:[%s475_s1] sm:$0xff]  ;;  %vm39_vm2 = vcmask 261120   ;;  %v27_v12 = vld [vmem:[%s474_s0 + $0x8] sm:$0xff] }
   0x6   :  { %334 = vmatprep.subr.mxu0 %v29_v6  ;;  %320 = vmatmul.mubr.msk.f32.vlgmr.msra.gmra.mxu1 %vm136_vm1, %v123_v7  ;;  %v26_v11 = vld [vmem:[%s474_s0] sm:$0xff] }
   0x7   :  { %321 = vmatprep.subr.msk.mxu1 %vm140_vm0, %v135_v8  ;;  %335 = vmatpush3.msra.mxu0 %v29_v6  ;;  %v126_v13 = vld [vmem:[%s479_s5] sm:$0xff]  ;;  %s373_s5 = smov [#allocation2]  }
   0x8   :  { %322 = vmatpush1.msk.msra.mxu1 %vm140_vm0, %v125_v5  ;;  %336 = vmatprep.subr.mxu0 %v28_v10  ;;  %v315_v18 = vld [vmem:[%s476_s2] ss:$0 sm:$0xff]  ;;  %s300_s21 = sshll.u32 %s373_s5, 4  ;;  %s301_s21 = int_to_ptr.vmem [resolvable:$true] %s300_s21 }
   0x9   :  { %337 = vmatpush3.msra.mxu0 %v28_v10  ;;  %338 = vmatprep.mubr.msk.f32.mxu0 %vm39_vm2, %v26_v11  ;;  %s349_s27 = scalar_lea.vmem %s301_s21, 256  ;;  %p354_p1 = scmp.lt.s32.totalorder %s301_s21, %s301_s21 }
   0xa   :  { %284 = vmatprep.mubr.f32.mxu1 %v371_v4  ;;  %339 = vmatmul.mubr.msk.f32.vlgmr.msra.gmra.mxu0 %vm39_vm2, %v27_v12  ;;  %p350_p0 = scmp.ne.s32.totalorder %s301_s21, %s349_s27  ;;  %p355_p2 = scmp.lt.s32.totalorder %s349_s27, %s349_s27 }
   0xb   :  { %323 = vmatmul.mubr.msk.f32.vlgmr.msra.gmra.mxu1 %vm136_vm1, %v123_v7  ;;  %129 = vperm.xlu0 %346, %v126_v13  }
   0xc   :  { %p356_p3 = por %p355_p2, %p354_p1 }
   0xe   :  { %p357_p4 = pnand %p356_p3, %p350_p0 }
  0x86   :  { %v130_v14 = vpop.permute.xlu0 %129 }
  0xc6   :  { %v215_v15 = vpop.f32.mrf.mxu1 }
  0xc7   :  { %v216_v16 = vadd.f32 %v215_v15, %v130_v14 }
  0xc8   :  { %v217_v17 = vpop.f32.mrf.mxu1 }
  0xc9   :  { %291 = vst [vmem:[%s481_s7] sm:$0xff] %v216_v16  ;;  %v218_v19 = vadd.f32 %v217_v17, %v130_v14 }
  0xca   :  { %v340_v20 = vpop.f32.mrf.mxu0 }
  0xcb   :  { %292 = vst [vmem:[%s481_s7 + $0x8] sm:$0xff] %v218_v19  ;;  %v118_v21 = vadd.f32 %v340_v20, %v315_v18  ;;  %v286_v22 = vpop.f32.mrf.mxu1 }
  0xcc   :  { %v287_v23 = vadd.f32 %v286_v22, %v130_v14  ;;  %v112_v24 = vpop.f32.mrf.mxu0 }
  0xcd   :  { %122 = vst.msk [vmem:[#allocation2 + $0x8] sm:$0xff] %vm39_vm2, %v118_v21  ;;  %v113_v25 = vadd.f32 %v315_v18, %v112_v24  ;;  %v288_v26 = vpop.f32.mrf.mxu1 }
  0xce   :  { %293 = vst [vmem:[%s481_s7 + $0x10] sm:$0xff] %v287_v23  ;;  %v289_v27 = vadd.f32 %v288_v26, %v130_v14 }
  0xcf   :  { %121 = vst.msk [vmem:[#allocation2] sm:$0xff] %vm39_vm2, %v113_v25 }
  0xd0   :  { %294 = vst [vmem:[%s481_s7 + $0x18] sm:$0xff] %v289_v27 }
  0xd1   :  { %360 = shalt.err (!%p357_p4)
}
  0xd2   :  { %s374_s28 = smov 128   ;;  %s375_s29 = smov 8  }
  0xd3   :  { %306 = dma.vmem_to_hbm [thread:$0]  %s301_s21, 256, %s480_s6, [#allocation3], %s374_s28, %s374_s28, %s375_s29  }
  0xd4   :  { %369 = dma.done.wait [#allocation3], 256  }
  0xd5   :  { %370 = vsyncadd [#allocation3], 4294967040 }
  0xd6   :  { %314 = vsyncpa [#allocation3], 1 }

</bundles_post_ra>
